<compile_context>
chip_gen: v5e
topology: v5e:2x2
jax: 0.10.0
libtpu: 0.0.40
codegen_flags: <defaults>
</compile_context>

<pallas_src>
import functools
import math

import jax
import jax.numpy as jnp
from jax.experimental import pallas as pl
from jax.experimental.pallas import tpu as pltpu

_LANES = 128
# Minimum second-minor (sublane) granularity per element width.
_SUBLANES_BY_ITEMSIZE = {4: 8, 2: 16, 1: 32}
# Per x/out tile byte budget (review: ~4 MiB amortizes per-step overhead on v7x;
# vmem_limit_bytes below is raised so this also fits v5e's scoped VMEM).
_TARGET_TILE_BYTES = 4 * 1024 * 1024


def _round_up(a: int, m: int) -> int:
    return ((a + m - 1) // m) * m


def _pe_add_kernel(x_ref, pe_ref, o_ref, *, scale):
    # x_ref/o_ref: (BT, TR, 128) lane/sublane-dense tiles of BT batch elements.
    # pe_ref     : (TR, 128) matching positional-encoding tile, shared over batch.
    x = x_ref[...].astype(jnp.float32)
    pe = pe_ref[...].astype(jnp.float32)
    o_ref[...] = (x * scale + pe[None, :, :]).astype(o_ref.dtype)


def make_positional_encoding_table(embedding_size: int, max_length: int) -> jnp.ndarray:
    """Deterministic sinusoidal table, shape (1, max_length, embedding_size)."""
    position = jnp.arange(0, max_length, dtype=jnp.float32)[:, None]
    div_term = jnp.exp(
        jnp.arange(0, embedding_size, 2, dtype=jnp.float32)
        * (-math.log(10000.0) / embedding_size)
    )
    angles = position * div_term
    pe = jnp.zeros((max_length, embedding_size), dtype=jnp.float32)
    pe = pe.at[:, 0::2].set(jnp.sin(angles))
    pe = pe.at[:, 1::2].set(jnp.cos(angles))
    return pe[None, :, :]


def _pick_tile_rows(cp: int, sublanes: int, itemsize: int) -> int:
    """Largest row count <= byte budget that tiles cp exactly (no partial block)."""
    target = max(sublanes, _TARGET_TILE_BYTES // (_LANES * itemsize))
    if cp <= target:
        return cp
    r = (target // sublanes) * sublanes
    while r >= sublanes:
        if cp % r == 0:
            return r
        r -= sublanes
    return sublanes


def positional_encoding_forward(x: jnp.ndarray, pe_full: jnp.ndarray) -> jnp.ndarray:
    """x: (B, S, E); pe_full: (1, max_length, E) module buffer. Returns (B, S, E)."""
    B, S, E = x.shape
    L = pe_full.shape[1]
    assert pe_full.shape[0] == 1 and pe_full.shape[2] == E and S <= L
    scale = float(math.sqrt(E))

    itemsize = jnp.dtype(x.dtype).itemsize
    sublanes = _SUBLANES_BY_ITEMSIZE.get(itemsize, 8)

    # ---- lane-dense layout plumbing (reshapes are free when shapes align) ----
    N = S * E                                   # elements per batch element
    C_need = pl.cdiv(N, _LANES)                 # 128-lane rows needed
    lane_aligned = (N % _LANES == 0)
    full_extent_ok = lane_aligned and (C_need * _LANES * itemsize <= _TARGET_TILE_BYTES)

    if lane_aligned and (C_need % sublanes == 0 or full_extent_ok):
        # No padding: either rows are sublane-aligned, or a single full-extent
        # block covers them (block dim == full array dim is exempt from the
        # divisible-by-sublane rule).
        Cp, padded = C_need, False
    else:
        # TODO(synk): for truly unaligned N, pad once at model init or mask the
        # tail in-kernel instead of this per-call pad + trailing slice.
        Cp, padded = _round_up(C_need, sublanes), True

    TR = _pick_tile_rows(Cp, sublanes, itemsize)
    grid_c = Cp // TR

    # Fold batch into the tile when one seq-tile already covers all rows but is
    # far below the byte budget (small S*E case) -> keeps DMAs large.
    BT = 1
    if grid_c == 1:
        max_bt = max(1, _TARGET_TILE_BYTES // max(1, TR * _LANES * itemsize))
        for cand in range(min(B, max_bt), 0, -1):
            if B % cand == 0:
                BT = cand
                break
    grid_b = B // BT

    Np = Cp * _LANES
    x_flat = x.reshape(B, N)
    if padded:
        x_flat = jnp.pad(x_flat, ((0, 0), (0, Np - N)))
    x2 = x_flat.reshape(B, Cp, _LANES)

    # pe window in the same lane-dense layout: the first N flat elements of the
    # table are exactly pe[:, :S, :] flattened (row-major over (L, E)). In a real
    # model this (and the bf16 cast) would be precomputed once at init.
    pe_flat = pe_full.reshape(-1)[:N].astype(x.dtype)
    if Np > N:
        pe_flat = jnp.pad(pe_flat, (0, Np - N))
    pe2 = pe_flat.reshape(Cp, _LANES)

    # Explicit scoped-VMEM budget: 2 buffers each for x / out / pe tiles + headroom.
    tile_x_bytes = BT * TR * _LANES * itemsize
    tile_pe_bytes = TR * _LANES * itemsize
    vmem_needed = 2 * (2 * tile_x_bytes + tile_pe_bytes)
    vmem_limit = int(min(max(vmem_needed + (8 << 20), 32 << 20), 48 << 20))

    cost = pl.CostEstimate(
        flops=2 * B * Cp * _LANES,
        transcendentals=0,
        bytes_accessed=(2 * B * Cp + Cp) * _LANES * itemsize,
    )

    out2 = pl.pallas_call(
        functools.partial(_pe_add_kernel, scale=scale),
        out_shape=jax.ShapeDtypeStruct((B, Cp, _LANES), x.dtype),
        grid_spec=pltpu.PrefetchScalarGridSpec(
            num_scalar_prefetch=0,
            grid=(grid_c, grid_b),                # seq-tile OUTER, batch INNER
            in_specs=[
                pl.BlockSpec((BT, TR, _LANES), lambda c, b: (b, c, 0)),  # x tile
                pl.BlockSpec((TR, _LANES), lambda c, b: (c, 0)),         # pe tile (reused over batch)
            ],
            out_specs=pl.BlockSpec((BT, TR, _LANES), lambda c, b: (b, c, 0)),
        ),
        compiler_params=pltpu.CompilerParams(
            # seq-tile axis parallel (megacore shards along it on v7x, keeping pe
            # single-fetch chip-wide); batch axis arbitrary (inner loop, pe reuse).
            dimension_semantics=("parallel", "arbitrary"),
            vmem_limit_bytes=vmem_limit,
        ),
        cost_estimate=cost,
        input_output_aliases={0: 0},   # out2 matches x2 shape/dtype; lets XLA donate
    )(x2, pe2)

    out = out2.reshape(B, Np)
    if padded:
        out = out[:, :N]
    return out.reshape(B, S, E)


if __name__ == "__main__":
    # Small shapes consistent with the module: batch=2, seq=8, embedding=32
    embedding_size = 32
    max_length = 16
    B, S = 2, 8

    key = jax.random.PRNGKey(0)
    x = jax.random.normal(key, (B, S, embedding_size), dtype=jnp.float32)
    pe_full = make_positional_encoding_table(embedding_size, max_length)

    fwd = jax.jit(positional_encoding_forward)

    # f32, lane-aligned path (no pad / no slice, full-extent block).
    out = jax.block_until_ready(fwd(x, pe_full))
    ref = x * math.sqrt(embedding_size) + pe_full[:, :S, :]
    assert out.shape == (B, S, embedding_size) and out.dtype == x.dtype
    assert jnp.allclose(out, ref, atol=1e-5, rtol=1e-5)

    # Unaligned seq length exercises the padded fallback path.
    S2 = 5
    x_un = jax.random.normal(jax.random.PRNGKey(1), (B, S2, embedding_size), jnp.float32)
    out_un = jax.block_until_ready(fwd(x_un, pe_full))
    ref_un = x_un * math.sqrt(embedding_size) + pe_full[:, :S2, :]
    assert jnp.allclose(out_un, ref_un, atol=1e-5, rtol=1e-5)

    # bf16 I/O (half the HBM bytes on this bandwidth-bound op; math stays f32
    # in-register inside the kernel, cast on store).
    xb = x.astype(jnp.bfloat16)
    outb = jax.block_until_ready(fwd(xb, pe_full))
    refb = (
        xb.astype(jnp.float32) * math.sqrt(embedding_size)
        + pe_full[:, :S, :].astype(jnp.bfloat16).astype(jnp.float32)
    ).astype(jnp.bfloat16)
    assert outb.dtype == jnp.bfloat16
    assert jnp.allclose(outb.astype(jnp.float32), refb.astype(jnp.float32),
                        atol=1e-2, rtol=1e-2)

    print("KERNEL_OK")
</pallas_src>

<mosaic_0001>
module attributes {stable_mosaic.version = 11 : i64} {
  func.func @_pe_add_kernel(%arg0: i32, %arg1: i32, %arg2: memref<2x2x128xf32, #tpu.memory_space<vmem>>, %arg3: memref<2x128xf32, #tpu.memory_space<vmem>>, %arg4: memref<2x2x128xf32, #tpu.memory_space<vmem>>) attributes {dimension_semantics = [#tpu.dimension_semantics<parallel>, #tpu.dimension_semantics<arbitrary>], iteration_bounds = array<i64: 1, 1>, scalar_prefetch = 0 : i64, scratch_operands = 0 : i64, tpu.core_type = #tpu.core_type<tc>, window_params = [{transform_indices = @transform_0, window_bounds = array<i64: 2, 2, 128>}, {transform_indices = @transform_1, window_bounds = array<i64: 2, 128>}, {transform_indices = @transform_2, window_bounds = array<i64: 2, 2, 128>}]} {
    %c0 = arith.constant 0 : index
    %c0_0 = arith.constant 0 : index
    %c0_1 = arith.constant 0 : index
    %0 = vector.load %arg2[%c0, %c0_0, %c0_1] : memref<2x2x128xf32, #tpu.memory_space<vmem>>, vector<2x2x128xf32>
    %c0_2 = arith.constant 0 : index
    %c0_3 = arith.constant 0 : index
    %1 = vector.load %arg3[%c0_2, %c0_3] : memref<2x128xf32, #tpu.memory_space<vmem>>, vector<2x128xf32>
    %cst = arith.constant 5.65685415 : f32
    %2 = vector.broadcast %cst : f32 to vector<2x2x128xf32>
    %3 = arith.mulf %0, %2 : vector<2x2x128xf32>
    %4 = vector.shape_cast %1 : vector<2x128xf32> to vector<1x2x128xf32>
    %5 = vector.broadcast %4 : vector<1x2x128xf32> to vector<2x2x128xf32>
    %6 = arith.addf %3, %5 : vector<2x2x128xf32>
    %c0_4 = arith.constant 0 : index
    %c0_5 = arith.constant 0 : index
    %c0_6 = arith.constant 0 : index
    %7 = vector.load %arg4[%c0_4, %c0_5, %c0_6] : memref<2x2x128xf32, #tpu.memory_space<vmem>>, vector<2x2x128xf32>
    tpu.vector_store %arg4[%c0_4, %c0_5, %c0_6], %6 {strides = array<i32>} : memref<2x2x128xf32, #tpu.memory_space<vmem>>, vector<2x2x128xf32>,
    return
  }
  func.func @transform_0(%arg0: i32, %arg1: i32) -> (i32, i32, i32) {
    %c0_i32 = arith.constant 0 : i32
    %c0_i32_0 = arith.constant 0 : i32
    return %arg1, %arg0, %c0_i32 : i32, i32, i32
  }
  func.func @transform_1(%arg0: i32, %arg1: i32) -> (i32, i32) {
    %c0_i32 = arith.constant 0 : i32
    %c0_i32_0 = arith.constant 0 : i32
    return %arg0, %c0_i32 : i32, i32
  }
  func.func @transform_2(%arg0: i32, %arg1: i32) -> (i32, i32, i32) {
    %c0_i32 = arith.constant 0 : i32
    %c0_i32_0 = arith.constant 0 : i32
    return %arg1, %arg0, %c0_i32 : i32, i32, i32
  }
}

</mosaic_0001>

<bundles_post_ra>
// kernel: positional_encoding_forward.1
= control target key start
LH: loop header
LB: loop body
LE: loop exit
PB: predicated region body
PF: predicated region fallthrough
CT: control target
= control target key end

     0   :  { %s54_s0 = inlined_call_operand.vmem [shape: f32[2,2,128], index: 0, kind: input, shape index: {}, may-alias: {0,2}]   ;;  %s55_s1 = inlined_call_operand.vmem [shape: f32[2,128], index: 1, kind: input, shape index: {}]   ;;  %s56_s2 = inlined_call_operand.vmem [shape: f32[2,2,128], index: 2, kind: output, shape index: {}, may-alias: {0,2}]  }
   0x1   :  { %v11_v0 = vld [vmem:[%s54_s0] sm:$0x3]  ;;  %v12_v2 = vld [vmem:[%s54_s0 + $0x2] sm:$0x3] }
   0x2   :  { %v13_v1 = vld [vmem:[%s55_s1] sm:$0x3]  ;;  %v14_v3 = vmul.f32 5.656854, %v11_v0  ;;  %v15_v4 = vmul.f32 5.656854, %v12_v2 }
   0x4   :  { %v16_v5 = vadd.f32 %v14_v3, %v13_v1  ;;  %v17_v6 = vadd.f32 %v15_v4, %v13_v1 }
   0x6   :  { %18 = vst [vmem:[%s56_s2] sm:$0x3] %v16_v5 }
   0x7   :  { %19 = vst [vmem:[%s56_s2 + $0x2] sm:$0x3] %v17_v6 }

</bundles_post_ra>
